<compile_context>
chip_gen: v7x
topology: tpu7x:2x2x1
jax: 0.10.0
libtpu: 0.0.40
codegen_flags: <defaults>
</compile_context>

<pallas_src>
import functools
import numpy as np
import jax
import jax.numpy as jnp
from jax.experimental import pallas as pl
from jax.experimental.pallas import tpu as pltpu


def _freq_bands(multires):
    # log_sampling=True: 2 ** linspace(0, multires-1, multires)
    return tuple(float(f) for f in (2.0 ** np.linspace(0.0, multires - 1, multires)))


def _can_use_recurrence(freqs):
    # Double-angle recurrence is valid only when each freq is exactly 2x the previous.
    return all(freqs[k] == freqs[0] * (2.0 ** k) for k in range(len(freqs)))


def _round_up(n, m):
    return ((n + m - 1) // m) * m


def _pe_mlp_kernel(freqs, use_rec, neg_slope,
                   x_ref, w1b_ref, b1_ref, w2b_ref, b2_ref, o_ref):
    """Packed-token positional encoding + Linear -> LeakyReLU -> (Dropout=id) -> Linear.

    x_ref:   (T4, 3*gpr)            gpr consecutive tokens packed per row
    w1b_ref: (G, 3*gpr, d*gpr)      per-group block-diag first-layer weights (G = 1+2*multires)
    b1_ref:  (1, d*gpr)
    w2b_ref: (d*gpr, d*gpr)         block-diag second-layer weights
    b2_ref:  (1, d*gpr)
    o_ref:   (T4, d*gpr)            lane-dense output (128 wide for d_model=32, gpr=4)
    """
    x = x_ref[...]                                     # (T4, 3*gpr) f32

    # Group 0: include_input.  PE is folded into per-group matmul accumulation
    # (no concatenate -> no XLU relayout of 3-wide slabs).
    acc = jnp.dot(x, w1b_ref[0], preferred_element_type=jnp.float32)

    if use_rec:
        ang = x if freqs[0] == 1.0 else x * freqs[0]
        s = jnp.sin(ang)
        c = jnp.cos(ang)
        for k in range(len(freqs)):
            acc += jnp.dot(s, w1b_ref[2 * k + 1], preferred_element_type=jnp.float32)
            acc += jnp.dot(c, w1b_ref[2 * k + 2], preferred_element_type=jnp.float32)
            if k + 1 < len(freqs):
                # sin(2t) = 2*s*c ; cos(2t) = 1 - 2*s^2   (freqs are exact powers of two)
                s, c = 2.0 * s * c, 1.0 - 2.0 * s * s
    else:
        for k, f in enumerate(freqs):
            acc += jnp.dot(jnp.sin(x * f), w1b_ref[2 * k + 1],
                           preferred_element_type=jnp.float32)
            acc += jnp.dot(jnp.cos(x * f), w1b_ref[2 * k + 2],
                           preferred_element_type=jnp.float32)

    h = acc + b1_ref[...]                              # bias added once, after the sum
    h = jnp.where(h > 0, h, neg_slope * h)             # LeakyReLU(negative_slope=0.01)
    # nn.Dropout(0.1): identity in eval mode.
    out = jnp.dot(h, w2b_ref[...], preferred_element_type=jnp.float32) + b2_ref[...]
    o_ref[...] = out.astype(o_ref.dtype)


def _pe_only_kernel(freqs, use_rec, x_ref, o_ref):
    """Positional encoding only (use_learnable=False path), per-token layout."""
    x = x_ref[...]                                     # (T, 3)
    feats = [x]
    if use_rec:
        ang = x if freqs[0] == 1.0 else x * freqs[0]
        s = jnp.sin(ang)
        c = jnp.cos(ang)
        for k in range(len(freqs)):
            feats.append(s)
            feats.append(c)
            if k + 1 < len(freqs):
                s, c = 2.0 * s * c, 1.0 - 2.0 * s * s
    else:
        for f in freqs:
            feats.append(jnp.sin(x * f))
            feats.append(jnp.cos(x * f))
    o_ref[...] = jnp.concatenate(feats, axis=-1).astype(o_ref.dtype)


def positional_encoding_mlp(x, params, multires, d_model, use_learnable=True,
                            tile_tokens=2048):
    """JAX wrapper around the Pallas kernels.

    x: (..., 3) float32
    params: (w1 (embed_dim, d_model), b1 (1, d_model), w2 (d_model, d_model), b2 (1, d_model))
            (nn.Linear weights stored transposed: (in, out))
    """
    orig_lead = x.shape[:-1]
    assert x.shape[-1] == 3
    N = int(np.prod(orig_lead)) if orig_lead else 1
    x2 = x.reshape(N, 3).astype(jnp.float32)

    freqs = _freq_bands(multires)
    use_rec = _can_use_recurrence(freqs)
    embed_dim = 3 + 3 * 2 * multires
    n_groups = 1 + 2 * multires
    neg_slope = 0.01

    compiler_params = pltpu.CompilerParams(dimension_semantics=("parallel",))

    if not use_learnable:
        tile = _round_up(min(tile_tokens, _round_up(N, 8)), 8)
        Np = _round_up(N, tile)
        if Np != N:
            # Only the tail tile carries padding (Np - N < tile).
            x2 = jnp.pad(x2, ((0, Np - N), (0, 0)))
        out = pl.pallas_call(
            functools.partial(_pe_only_kernel, freqs, use_rec),
            out_shape=jax.ShapeDtypeStruct((Np, embed_dim), jnp.float32),
            grid=(Np // tile,),
            in_specs=[pl.BlockSpec((tile, 3), lambda i: (i, 0))],
            out_specs=pl.BlockSpec((tile, embed_dim), lambda i: (i, 0)),
            compiler_params=compiler_params,
        )(x2)
        return out[:N].reshape(*orig_lead, embed_dim)

    w1, b1, w2, b2 = params

    # Pack gpr consecutive tokens per row so the output block is 128 lanes wide.
    gpr = 128 // d_model if (d_model < 128 and 128 % d_model == 0) else 1
    align = 8 * gpr

    tile = _round_up(min(tile_tokens, _round_up(N, align)), align)
    Np = _round_up(N, tile)
    if Np != N:
        x2 = jnp.pad(x2, ((0, Np - N), (0, 0)))

    # Pure row-major layout plumbing: (Np, 3) -> (Np/gpr, 3*gpr).
    x_g = x2.reshape(Np // gpr, 3 * gpr)

    # Block-diagonal replication (kron(I_gpr, W)) so the packed layout computes the
    # identical per-token Linear layers.  Tiny one-time wrapper-side arrays.
    eye = jnp.eye(gpr, dtype=jnp.float32)
    w1_g = w1.astype(jnp.float32).reshape(n_groups, 3, d_model)
    w1_blk = jax.vmap(lambda a: jnp.kron(eye, a))(w1_g)              # (G, 3*gpr, d*gpr)
    w2_blk = jnp.kron(eye, w2.astype(jnp.float32))                   # (d*gpr, d*gpr)
    b1_t = jnp.tile(b1.astype(jnp.float32).reshape(1, d_model), (1, gpr))
    b2_t = jnp.tile(b2.astype(jnp.float32).reshape(1, d_model), (1, gpr))

    t4 = tile // gpr
    dg = d_model * gpr

    out_g = pl.pallas_call(
        functools.partial(_pe_mlp_kernel, freqs, use_rec, neg_slope),
        out_shape=jax.ShapeDtypeStruct((Np // gpr, dg), jnp.float32),
        grid=(Np // tile,),
        in_specs=[
            pl.BlockSpec((t4, 3 * gpr), lambda i: (i, 0)),
            # Weights/biases: constant index_map -> fetched once, VMEM-resident across steps.
            pl.BlockSpec((n_groups, 3 * gpr, dg), lambda i: (0, 0, 0)),
            pl.BlockSpec((1, dg), lambda i: (0, 0)),
            pl.BlockSpec((dg, dg), lambda i: (0, 0)),
            pl.BlockSpec((1, dg), lambda i: (0, 0)),
        ],
        out_specs=pl.BlockSpec((t4, dg), lambda i: (i, 0)),
        compiler_params=compiler_params,
    )(x_g, w1_blk, b1_t, w2_blk, b2_t)

    # Row-major un-pack: (Np/gpr, d*gpr) -> (Np, d) is free layout plumbing.
    out = out_g.reshape(Np, d_model)[:N]
    return out.reshape(*orig_lead, d_model)


def _reference(x, params, multires, d_model):
    """Pure-JAX reference mirroring the PyTorch module (eval mode), direct sin/cos."""
    w1, b1, w2, b2 = params
    feats = [x]
    for f in _freq_bands(multires):
        feats.append(jnp.sin(x * f))
        feats.append(jnp.cos(x * f))
    emb = jnp.concatenate(feats, axis=-1)
    lead = x.shape[:-1]
    h = emb.reshape(-1, emb.shape[-1]) @ w1 + b1
    h = jnp.where(h > 0, h, 0.01 * h)
    out = h @ w2 + b2
    return out.reshape(*lead, d_model)


def _reference_embed(x, multires):
    feats = [x]
    for f in _freq_bands(multires):
        feats.append(jnp.sin(x * f))
        feats.append(jnp.cos(x * f))
    return jnp.concatenate(feats, axis=-1)


if __name__ == "__main__":
    # transformer_args (synthetic): multi_res_dimension_in_transformer_pos_encode=4,
    # d_model=32, use_learnable=True
    multires = 4
    d_model = 32
    embed_dim = 3 + 3 * 2 * multires  # 27

    key = jax.random.PRNGKey(0)
    k_x, k_w1, k_b1, k_w2, k_b2 = jax.random.split(key, 5)

    # x: (batch=2, seq=8, 3)
    x = jax.random.normal(k_x, (2, 8, 3), dtype=jnp.float32)

    # Deterministic synthetic parameters (nn.Linear weights stored transposed: (in, out)).
    w1 = jax.random.normal(k_w1, (embed_dim, d_model), dtype=jnp.float32) * 0.1
    b1 = jax.random.normal(k_b1, (1, d_model), dtype=jnp.float32) * 0.01
    w2 = jax.random.normal(k_w2, (d_model, d_model), dtype=jnp.float32) * 0.1
    b2 = jax.random.normal(k_b2, (1, d_model), dtype=jnp.float32) * 0.01
    params = (w1, b1, w2, b2)

    # Learnable path (embedding + MLP).
    out = positional_encoding_mlp(x, params, multires, d_model, use_learnable=True)
    out = jax.block_until_ready(out)
    ref = _reference(x, params, multires, d_model)
    assert out.shape == (2, 8, d_model), out.shape
    assert jnp.allclose(out, ref, atol=1e-4, rtol=1e-4), float(jnp.max(jnp.abs(out - ref)))

    # Embedding-only path (use_learnable=False).
    out_pe = positional_encoding_mlp(x, None, multires, d_model, use_learnable=False)
    out_pe = jax.block_until_ready(out_pe)
    ref_pe = _reference_embed(x, multires)
    assert out_pe.shape == (2, 8, embed_dim), out_pe.shape
    assert jnp.allclose(out_pe, ref_pe, atol=1e-4, rtol=1e-4), \
        float(jnp.max(jnp.abs(out_pe - ref_pe)))

    print("KERNEL_OK")
</pallas_src>

<mosaic_0001>
module attributes {stable_mosaic.version = 11 : i64} {
  func.func @_pe_mlp_kernel(%arg0: i32, %arg1: memref<8x12xf32, #tpu.memory_space<vmem>>, %arg2: memref<9x12x128xf32, #tpu.memory_space<vmem>>, %arg3: memref<1x128xf32, #tpu.memory_space<vmem>>, %arg4: memref<128x128xf32, #tpu.memory_space<vmem>>, %arg5: memref<1x128xf32, #tpu.memory_space<vmem>>, %arg6: memref<8x128xf32, #tpu.memory_space<vmem>>) attributes {dimension_semantics = [#tpu.dimension_semantics<parallel>], iteration_bounds = array<i64: 1>, scalar_prefetch = 0 : i64, scratch_operands = 0 : i64, tpu.core_type = #tpu.core_type<tc>, window_params = [{transform_indices = @transform_0, window_bounds = array<i64: 8, 12>}, {pipeline_mode = #tpu.pipeline_mode<synchronous>, transform_indices = @transform_1, window_bounds = array<i64: 9, 12, 128>}, {pipeline_mode = #tpu.pipeline_mode<synchronous>, transform_indices = @transform_2, window_bounds = array<i64: 1, 128>}, {pipeline_mode = #tpu.pipeline_mode<synchronous>, transform_indices = @transform_3, window_bounds = array<i64: 128, 128>}, {pipeline_mode = #tpu.pipeline_mode<synchronous>, transform_indices = @transform_4, window_bounds = array<i64: 1, 128>}, {transform_indices = @transform_5, window_bounds = array<i64: 8, 128>}]} {
    %c0 = arith.constant 0 : index
    %c0_0 = arith.constant 0 : index
    %0 = vector.load %arg1[%c0, %c0_0] : memref<8x12xf32, #tpu.memory_space<vmem>>, vector<8x12xf32>
    %c0_1 = arith.constant 0 : index
    %c0_2 = arith.constant 0 : index
    %c0_3 = arith.constant 0 : index
    %1 = vector.load %arg2[%c0_1, %c0_2, %c0_3] : memref<9x12x128xf32, #tpu.memory_space<vmem>>, vector<1x12x128xf32>
    %2 = vector.shape_cast %1 : vector<1x12x128xf32> to vector<12x128xf32>
    %cst = arith.constant dense<0.000000e+00> : vector<8x128xf32>
    %3 = tpu.matmul %0, %2, %cst {dimension_numbers = #tpu.dot_dimension_numbers<[1], [0], [0], [1], [0, 0, 1, 1], [], []>} : vector<8x12xf32>, vector<12x128xf32>, vector<8x128xf32> -> vector<8x128xf32>
    %4 = math.sin %0 : vector<8x12xf32>
    %5 = math.cos %0 : vector<8x12xf32>
    %c1 = arith.constant 1 : index
    %c0_4 = arith.constant 0 : index
    %c0_5 = arith.constant 0 : index
    %6 = vector.load %arg2[%c1, %c0_4, %c0_5] : memref<9x12x128xf32, #tpu.memory_space<vmem>>, vector<1x12x128xf32>
    %7 = vector.shape_cast %6 : vector<1x12x128xf32> to vector<12x128xf32>
    %cst_6 = arith.constant dense<0.000000e+00> : vector<8x128xf32>
    %8 = tpu.matmul %4, %7, %cst_6 {dimension_numbers = #tpu.dot_dimension_numbers<[1], [0], [0], [1], [0, 0, 1, 1], [], []>} : vector<8x12xf32>, vector<12x128xf32>, vector<8x128xf32> -> vector<8x128xf32>
    %9 = arith.addf %3, %8 : vector<8x128xf32>
    %c2 = arith.constant 2 : index
    %c0_7 = arith.constant 0 : index
    %c0_8 = arith.constant 0 : index
    %10 = vector.load %arg2[%c2, %c0_7, %c0_8] : memref<9x12x128xf32, #tpu.memory_space<vmem>>, vector<1x12x128xf32>
    %11 = vector.shape_cast %10 : vector<1x12x128xf32> to vector<12x128xf32>
    %cst_9 = arith.constant dense<0.000000e+00> : vector<8x128xf32>
    %12 = tpu.matmul %5, %11, %cst_9 {dimension_numbers = #tpu.dot_dimension_numbers<[1], [0], [0], [1], [0, 0, 1, 1], [], []>} : vector<8x12xf32>, vector<12x128xf32>, vector<8x128xf32> -> vector<8x128xf32>
    %13 = arith.addf %9, %12 : vector<8x128xf32>
    %cst_10 = arith.constant 2.000000e+00 : f32
    %14 = vector.broadcast %cst_10 : f32 to vector<8x12xf32>
    %15 = arith.mulf %14, %4 : vector<8x12xf32>
    %16 = arith.mulf %15, %5 : vector<8x12xf32>
    %cst_11 = arith.constant 2.000000e+00 : f32
    %17 = vector.broadcast %cst_11 : f32 to vector<8x12xf32>
    %18 = arith.mulf %17, %4 : vector<8x12xf32>
    %19 = arith.mulf %18, %4 : vector<8x12xf32>
    %cst_12 = arith.constant 1.000000e+00 : f32
    %20 = vector.broadcast %cst_12 : f32 to vector<8x12xf32>
    %21 = arith.subf %20, %19 : vector<8x12xf32>
    %c3 = arith.constant 3 : index
    %c0_13 = arith.constant 0 : index
    %c0_14 = arith.constant 0 : index
    %22 = vector.load %arg2[%c3, %c0_13, %c0_14] : memref<9x12x128xf32, #tpu.memory_space<vmem>>, vector<1x12x128xf32>
    %23 = vector.shape_cast %22 : vector<1x12x128xf32> to vector<12x128xf32>
    %cst_15 = arith.constant dense<0.000000e+00> : vector<8x128xf32>
    %24 = tpu.matmul %16, %23, %cst_15 {dimension_numbers = #tpu.dot_dimension_numbers<[1], [0], [0], [1], [0, 0, 1, 1], [], []>} : vector<8x12xf32>, vector<12x128xf32>, vector<8x128xf32> -> vector<8x128xf32>
    %25 = arith.addf %13, %24 : vector<8x128xf32>
    %c4 = arith.constant 4 : index
    %c0_16 = arith.constant 0 : index
    %c0_17 = arith.constant 0 : index
    %26 = vector.load %arg2[%c4, %c0_16, %c0_17] : memref<9x12x128xf32, #tpu.memory_space<vmem>>, vector<1x12x128xf32>
    %27 = vector.shape_cast %26 : vector<1x12x128xf32> to vector<12x128xf32>
    %cst_18 = arith.constant dense<0.000000e+00> : vector<8x128xf32>
    %28 = tpu.matmul %21, %27, %cst_18 {dimension_numbers = #tpu.dot_dimension_numbers<[1], [0], [0], [1], [0, 0, 1, 1], [], []>} : vector<8x12xf32>, vector<12x128xf32>, vector<8x128xf32> -> vector<8x128xf32>
    %29 = arith.addf %25, %28 : vector<8x128xf32>
    %cst_19 = arith.constant 2.000000e+00 : f32
    %30 = vector.broadcast %cst_19 : f32 to vector<8x12xf32>
    %31 = arith.mulf %30, %16 : vector<8x12xf32>
    %32 = arith.mulf %31, %21 : vector<8x12xf32>
    %cst_20 = arith.constant 2.000000e+00 : f32
    %33 = vector.broadcast %cst_20 : f32 to vector<8x12xf32>
    %34 = arith.mulf %33, %16 : vector<8x12xf32>
    %35 = arith.mulf %34, %16 : vector<8x12xf32>
    %cst_21 = arith.constant 1.000000e+00 : f32
    %36 = vector.broadcast %cst_21 : f32 to vector<8x12xf32>
    %37 = arith.subf %36, %35 : vector<8x12xf32>
    %c5 = arith.constant 5 : index
    %c0_22 = arith.constant 0 : index
    %c0_23 = arith.constant 0 : index
    %38 = vector.load %arg2[%c5, %c0_22, %c0_23] : memref<9x12x128xf32, #tpu.memory_space<vmem>>, vector<1x12x128xf32>
    %39 = vector.shape_cast %38 : vector<1x12x128xf32> to vector<12x128xf32>
    %cst_24 = arith.constant dense<0.000000e+00> : vector<8x128xf32>
    %40 = tpu.matmul %32, %39, %cst_24 {dimension_numbers = #tpu.dot_dimension_numbers<[1], [0], [0], [1], [0, 0, 1, 1], [], []>} : vector<8x12xf32>, vector<12x128xf32>, vector<8x128xf32> -> vector<8x128xf32>
    %41 = arith.addf %29, %40 : vector<8x128xf32>
    %c6 = arith.constant 6 : index
    %c0_25 = arith.constant 0 : index
    %c0_26 = arith.constant 0 : index
    %42 = vector.load %arg2[%c6, %c0_25, %c0_26] : memref<9x12x128xf32, #tpu.memory_space<vmem>>, vector<1x12x128xf32>
    %43 = vector.shape_cast %42 : vector<1x12x128xf32> to vector<12x128xf32>
    %cst_27 = arith.constant dense<0.000000e+00> : vector<8x128xf32>
    %44 = tpu.matmul %37, %43, %cst_27 {dimension_numbers = #tpu.dot_dimension_numbers<[1], [0], [0], [1], [0, 0, 1, 1], [], []>} : vector<8x12xf32>, vector<12x128xf32>, vector<8x128xf32> -> vector<8x128xf32>
    %45 = arith.addf %41, %44 : vector<8x128xf32>
    %cst_28 = arith.constant 2.000000e+00 : f32
    %46 = vector.broadcast %cst_28 : f32 to vector<8x12xf32>
    %47 = arith.mulf %46, %32 : vector<8x12xf32>
    %48 = arith.mulf %47, %37 : vector<8x12xf32>
    %cst_29 = arith.constant 2.000000e+00 : f32
    %49 = vector.broadcast %cst_29 : f32 to vector<8x12xf32>
    %50 = arith.mulf %49, %32 : vector<8x12xf32>
    %51 = arith.mulf %50, %32 : vector<8x12xf32>
    %cst_30 = arith.constant 1.000000e+00 : f32
    %52 = vector.broadcast %cst_30 : f32 to vector<8x12xf32>
    %53 = arith.subf %52, %51 : vector<8x12xf32>
    %c7 = arith.constant 7 : index
    %c0_31 = arith.constant 0 : index
    %c0_32 = arith.constant 0 : index
    %54 = vector.load %arg2[%c7, %c0_31, %c0_32] : memref<9x12x128xf32, #tpu.memory_space<vmem>>, vector<1x12x128xf32>
    %55 = vector.shape_cast %54 : vector<1x12x128xf32> to vector<12x128xf32>
    %cst_33 = arith.constant dense<0.000000e+00> : vector<8x128xf32>
    %56 = tpu.matmul %48, %55, %cst_33 {dimension_numbers = #tpu.dot_dimension_numbers<[1], [0], [0], [1], [0, 0, 1, 1], [], []>} : vector<8x12xf32>, vector<12x128xf32>, vector<8x128xf32> -> vector<8x128xf32>
    %57 = arith.addf %45, %56 : vector<8x128xf32>
    %c8 = arith.constant 8 : index
    %c0_34 = arith.constant 0 : index
    %c0_35 = arith.constant 0 : index
    %58 = vector.load %arg2[%c8, %c0_34, %c0_35] : memref<9x12x128xf32, #tpu.memory_space<vmem>>, vector<1x12x128xf32>
    %59 = vector.shape_cast %58 : vector<1x12x128xf32> to vector<12x128xf32>
    %cst_36 = arith.constant dense<0.000000e+00> : vector<8x128xf32>
    %60 = tpu.matmul %53, %59, %cst_36 {dimension_numbers = #tpu.dot_dimension_numbers<[1], [0], [0], [1], [0, 0, 1, 1], [], []>} : vector<8x12xf32>, vector<12x128xf32>, vector<8x128xf32> -> vector<8x128xf32>
    %61 = arith.addf %57, %60 : vector<8x128xf32>
    %c0_37 = arith.constant 0 : index
    %c0_38 = arith.constant 0 : index
    %62 = vector.load %arg3[%c0_37, %c0_38] : memref<1x128xf32, #tpu.memory_space<vmem>>, vector<1x128xf32>
    %63 = vector.broadcast %62 : vector<1x128xf32> to vector<8x128xf32>
    %64 = arith.addf %61, %63 : vector<8x128xf32>
    %cst_39 = arith.constant 0.000000e+00 : f32
    %65 = vector.broadcast %cst_39 : f32 to vector<8x128xf32>
    %66 = arith.cmpf ogt, %64, %65 : vector<8x128xf32>
    %cst_40 = arith.constant 0.00999999977 : f32
    %67 = vector.broadcast %cst_40 : f32 to vector<8x128xf32>
    %68 = arith.mulf %67, %64 : vector<8x128xf32>
    %69 = arith.select %66, %64, %68 : vector<8x128xi1>, vector<8x128xf32>
    %c0_41 = arith.constant 0 : index
    %c0_42 = arith.constant 0 : index
    %70 = vector.load %arg4[%c0_41, %c0_42] : memref<128x128xf32, #tpu.memory_space<vmem>>, vector<128x128xf32>
    %cst_43 = arith.constant dense<0.000000e+00> : vector<8x128xf32>
    %71 = tpu.matmul %69, %70, %cst_43 {dimension_numbers = #tpu.dot_dimension_numbers<[1], [0], [0], [1], [0, 0, 1, 1], [], []>} : vector<8x128xf32>, vector<128x128xf32>, vector<8x128xf32> -> vector<8x128xf32>
    %c0_44 = arith.constant 0 : index
    %c0_45 = arith.constant 0 : index
    %72 = vector.load %arg5[%c0_44, %c0_45] : memref<1x128xf32, #tpu.memory_space<vmem>>, vector<1x128xf32>
    %73 = vector.broadcast %72 : vector<1x128xf32> to vector<8x128xf32>
    %74 = arith.addf %71, %73 : vector<8x128xf32>
    %c0_46 = arith.constant 0 : index
    %c0_47 = arith.constant 0 : index
    %75 = vector.load %arg6[%c0_46, %c0_47] : memref<8x128xf32, #tpu.memory_space<vmem>>, vector<8x128xf32>
    tpu.vector_store %arg6[%c0_46, %c0_47], %74 {strides = array<i32>} : memref<8x128xf32, #tpu.memory_space<vmem>>, vector<8x128xf32>,
    return
  }
  func.func @transform_0(%arg0: i32) -> (i32, i32) {
    %c0_i32 = arith.constant 0 : i32
    %c0_i32_0 = arith.constant 0 : i32
    return %arg0, %c0_i32 : i32, i32
  }
  func.func @transform_1(%arg0: i32) -> (i32, i32, i32) {
    %c0_i32 = arith.constant 0 : i32
    %c0_i32_0 = arith.constant 0 : i32
    %c0_i32_1 = arith.constant 0 : i32
    %c0_i32_2 = arith.constant 0 : i32
    return %c0_i32, %c0_i32_0, %c0_i32_1 : i32, i32, i32
  }
  func.func @transform_2(%arg0: i32) -> (i32, i32) {
    %c0_i32 = arith.constant 0 : i32
    %c0_i32_0 = arith.constant 0 : i32
    %c0_i32_1 = arith.constant 0 : i32
    return %c0_i32, %c0_i32_0 : i32, i32
  }
  func.func @transform_3(%arg0: i32) -> (i32, i32) {
    %c0_i32 = arith.constant 0 : i32
    %c0_i32_0 = arith.constant 0 : i32
    %c0_i32_1 = arith.constant 0 : i32
    return %c0_i32, %c0_i32_0 : i32, i32
  }
  func.func @transform_4(%arg0: i32) -> (i32, i32) {
    %c0_i32 = arith.constant 0 : i32
    %c0_i32_0 = arith.constant 0 : i32
    %c0_i32_1 = arith.constant 0 : i32
    return %c0_i32, %c0_i32_0 : i32, i32
  }
  func.func @transform_5(%arg0: i32) -> (i32, i32) {
    %c0_i32 = arith.constant 0 : i32
    %c0_i32_0 = arith.constant 0 : i32
    return %arg0, %c0_i32 : i32, i32
  }
}

</mosaic_0001>

<bundles_post_ra>
// kernel: tpu_custom_call.1
= control target key start
LH: loop header
LB: loop body
LE: loop exit
PB: predicated region body
PF: predicated region fallthrough
CT: control target
= control target key end

     0   :  { %10 = vsyncpa [#allocation3], 0  ;;  %s1664_s0 = inlined_call_operand.hbm [shape: f32[8,12], index: 0, kind: input, shape index: {}]   ;;  %s1665_s1 = inlined_call_operand.hbm [shape: f32[9,12,128], index: 1, kind: input, shape index: {}]   ;;  %s1666_s2 = inlined_call_operand.vmem [shape: f32[1,128], index: 2, kind: input, shape index: {}]   ;;  %s1667_s3 = inlined_call_operand.hbm [shape: f32[128,128], index: 3, kind: input, shape index: {}]   ;;  %s1668_s4 = inlined_call_operand.vmem [shape: f32[1,128], index: 4, kind: input, shape index: {}]   ;;  %s1669_s5 = inlined_call_operand.hbm [shape: f32[8,128], index: 5, kind: output, shape index: {}]  }
   0x1   :  { %11 = vsyncpa [#allocation6], 0 }
   0x2   :  { %12 = vsyncpa [#allocation4], 0  ;;  %s1468_s18 = smov [#allocation5]   ;;  %s1374_s22 = scalar_lea.hbm %s1665_s1, 2304 }
   0x3   :  { %s28_s19 = sshll.u32 %s1468_s18, 4  ;;  %p1375_p0 = scmp.ne.s32.totalorder %s1665_s1, %s1374_s22  ;;  %s29_s19 = int_to_ptr.vmem [resolvable:$true] %s28_s19 }
   0x4   :  { %p1378_p1 = scmp.lt.u32.totalorder %s1374_s22, %s1665_s1 }
   0x6   :  { %p1380_p2 = pnand %p1378_p1, %p1375_p0 }
   0x8   :  { %1383 = shalt.err (!%p1380_p2)
}
   0x9   :  { %s1384_s27 = scalar_lea.vmem %s29_s19, 2304  ;;  %p1389_p4 = scmp.lt.s32.totalorder %s29_s19, %s29_s19 }
   0xa   :  { %p1385_p3 = scmp.ne.s32.totalorder %s29_s19, %s1384_s27  ;;  %p1390_p5 = scmp.lt.s32.totalorder %s1384_s27, %s1384_s27 }
   0xc   :  { %p1391_p6 = por %p1390_p5, %p1389_p4 }
   0xe   :  { %p1392_p7 = pnand %p1391_p6, %p1385_p3 }
  0x10   :  { %1395 = shalt.err (!%p1392_p7)
}
  0x11   :  { %s1469_s28 = smov 128   ;;  %s1470_s29 = smov 8  }
  0x12   :  { %34 = dma.hbm_to_vmem [thread:$0]  %s1665_s1, 2304, %s29_s19, [#allocation6], %s1469_s28, %s1469_s28, %s1470_s29  }
  0x13   :  { %s1471_s7 = smov [#allocation2]   ;;  %s1472_s9 = smov [#allocation7]  }
  0x14   :  { %s19_s8 = sshll.u32 %s1471_s7, 4  ;;  %s42_s10 = sshll.u32 %s1472_s9, 4  ;;  %s20_s8 = int_to_ptr.vmem [resolvable:$true] %s19_s8  ;;  %s43_s10 = int_to_ptr.vmem [resolvable:$true] %s42_s10 }
  0x15   :  { %s1396_s13 = scalar_lea.hbm %s1664_s0, 128 }
  0x16   :  { %p1397_p8 = scmp.ne.s32.totalorder %s1664_s0, %s1396_s13  ;;  %p1400_p9 = scmp.lt.u32.totalorder %s1396_s13, %s1664_s0 }
  0x18   :  { %p1402_p10 = pnand %p1400_p9, %p1397_p8 }
  0x1a   :  { %1405 = shalt.err (!%p1402_p10)
}
  0x1b   :  { %s1406_s1 = scalar_lea.vmem %s20_s8, 128  ;;  %p1411_p12 = scmp.lt.s32.totalorder %s20_s8, %s20_s8 }
  0x1c   :  { %p1407_p11 = scmp.ne.s32.totalorder %s20_s8, %s1406_s1  ;;  %p1412_p13 = scmp.lt.s32.totalorder %s1406_s1, %s1406_s1 }
  0x1e   :  { %p1413_p0 = por %p1412_p13, %p1411_p12 }
  0x20   :  { %p1414_p1 = pnand %p1413_p0, %p1407_p11 }
  0x22   :  { %1417 = shalt.err (!%p1414_p1)
}
  0x23   :  { %22 = dma.hbm_to_vmem [thread:$0]  %s1664_s0, 128, %s20_s8, [#allocation3]  }
  0x24   :  { %s1418_s22 = scalar_lea.hbm %s1667_s3, 2048 }
  0x25   :  { %p1419_p2 = scmp.ne.s32.totalorder %s1667_s3, %s1418_s22  ;;  %p1422_p3 = scmp.lt.u32.totalorder %s1418_s22, %s1667_s3 }
  0x27   :  { %p1424_p4 = pnand %p1422_p3, %p1419_p2 }
  0x29   :  { %1427 = shalt.err (!%p1424_p4)
}
  0x2a   :  { %s1428_s27 = scalar_lea.vmem %s43_s10, 2048  ;;  %p1433_p6 = scmp.lt.s32.totalorder %s43_s10, %s43_s10 }
  0x2b   :  { %p1429_p5 = scmp.ne.s32.totalorder %s43_s10, %s1428_s27  ;;  %p1434_p7 = scmp.lt.s32.totalorder %s1428_s27, %s1428_s27 }
  0x2d   :  { %p1435_p8 = por %p1434_p7, %p1433_p6 }
  0x2f   :  { %p1436_p9 = pnand %p1435_p8, %p1429_p5 }
  0x31   :  { %1439 = shalt.err (!%p1436_p9)
}
  0x32   :  { %48 = dma.hbm_to_vmem [thread:$0]  %s1667_s3, 2048, %s43_s10, [#allocation6], %s1469_s28, %s1469_s28, %s1470_s29  }
  0x33   :  { %1462 = dma.done.wait [#allocation3], 128  }
  0x34   :  { %1463 = vsyncadd [#allocation3], 4294967168 }
  0x35   :  { %1464 = dma.done.wait [#allocation6], 4352  }
  0x36   :  { %1465 = vsyncadd [#allocation6], 4294962944  ;;  %v1473_v0 = vmov 0.0|0.0   ;;  %vm1474_vm0 = vmmov 0   ;;  %v1475_v1 = vmov 0.0   ;;  %vm277_vm1 = vcmask 1043456  }
  0x37   :  { %1290 = vmatprep.subr.bf16.mxu0 %v1473_v0  ;;  %1318 = vmatprep.subr.bf16.mxu1 %v1473_v0  ;;  %vm1476_vm2 = vmmov 1   ;;  %v271_v3 = vld [vmem:[#allocation5 + $0x10] sm:$0xff]  ;;  %v272_v4 = vld [vmem:[#allocation5 + $0x18] sm:$0xf]  ;;  %v1477_v21 = vmov 683565275  }
  0x38   :  { %1196 = vmatprep.mubr.msk.f32.mxu0 %vm1474_vm0, %v1475_v1  ;;  %1245 = vmatprep.mubr.msk.f32.mxu1 %vm1474_vm0, %v1475_v1  ;;  %vm1562_vm3 = vmpackc.low %vm277_vm1, %vm1476_vm2  ;;  %v1566_v5 = vld [vmem:[#allocation2] sm:$0xff]  ;;  %v1291_v6 = vpack.c.bf16 %v272_v4, %v271_v3  ;;  %v840_v11 = vld [vmem:[#allocation5 + $0x70] sm:$0xff]  ;;  %v1478_v23 = vmov 2475754826   ;;  %v1479_v25 = vmov 2131351028  }
  0x39   :  { %v66_v7 = vand.u32 2139095040, %v1566_v5  ;;  %v63_v9 = vand.u32 2147483647, %v1566_v5  ;;  %v841_v12 = vld [vmem:[#allocation5 + $0x78] sm:$0xf]  ;;  %vm65_vm11 = vcmp.lt.s32.totalorder %v1566_v5, 0 }
  0x3a   :  { %1293 = vmatpush3.bf16.msk.msra.mxu0 %vm1562_vm3, %v1291_v6  ;;  %v1319_v14 = vpack.c.bf16 %v841_v12, %v840_v11  ;;  %v1480_v27 = vmov 2102212464   ;;  %v1481_v29 = vmov 920167782   ;;  %v1482_v36 = vmov 1326507024  }
  0x3b   :  { %v67_v8 = vshrl.u32 %v66_v7, 23  ;;  %1294 = vmatprep.subr.bf16.mxu0 %v1473_v0  ;;  %v70_v15 = vand.u32 8388607, %v63_v9  ;;  %vm64_vm12 = vcmp.le.f32.partialorder %v63_v9, 0.7853982  ;;  %v1015_v2 = vld [vmem:[#allocation7 + $0x28] sm:$0xff] }
  0x3c   :  { %1321 = vmatpush3.bf16.msk.msra.mxu1 %vm1562_vm3, %v1319_v14  ;;  %v62_v9 = vld [vmem:[#allocation5 + $0x8] sm:$0xf]  ;;  %s1483_s7 = smov [#allocation8]  }
  0x3d   :  { %v1120_v10 = vadd.s32 4294967169, %v67_v8  ;;  %1326 = vmatprep.subr.bf16.mxu1 %v1473_v0  ;;  %v71_v18 = vor.u32 8388608, %v70_v15  ;;  %s1110_s8 = sshll.u32 %s1483_s7, 4  ;;  %s1111_s8 = int_to_ptr.vmem [resolvable:$true] %s1110_s8 }
  0x3e   :  { %s1440_s9 = scalar_lea.vmem %s1111_s8, 128  ;;  %p1445_p11 = scmp.lt.s32.totalorder %s1111_s8, %s1111_s8 }
  0x3f   :  { %v73_v13 = vadd.s32 1, %v1120_v10  ;;  %v111_v38 = vshll.u32 %v71_v18, 8  ;;  %p1441_p10 = scmp.ne.s32.totalorder %s1111_s8, %s1440_s9  ;;  %p1446_p12 = scmp.lt.s32.totalorder %s1440_s9, %s1440_s9 }
  0x41   :  { %vm74_vm4 = vcmp.gt.s32.totalorder %v73_v13, 0  ;;  %p1447_p13 = por %p1446_p12, %p1445_p11 }
  0x42   :  { %v75_v16 = vsel %vm74_vm4, %v73_v13, 0 }
  0x43   :  { %v77_v17 = vand.u32 31, %v75_v16  ;;  %v76_v19 = vshrl.u32 %v75_v16, 5  ;;  %p1448_p0 = pnand %p1447_p13, %p1441_p10 }
  0x45   :  { %v78_v20 = vsub.s32 32, %v77_v17  ;;  %v80_v22 = vshll.u32 %v1477_v21, %v77_v17  ;;  %v83_v24 = vshll.u32 %v1478_v23, %v77_v17  ;;  %v86_v26 = vshll.u32 %v1479_v25, %v77_v17 }
  0x46   :  { %v89_v28 = vshll.u32 %v1480_v27, %v77_v17  ;;  %v92_v30 = vshll.u32 %v1481_v29, %v77_v17  ;;  %vm95_vm5 = vcmp.lt.s32.totalorder %v76_v19, 1  ;;  %vm98_vm6 = vcmp.lt.s32.totalorder %v76_v19, 4 }
  0x47   :  { %v79_v31 = vshrl.u32 %v1477_v21, %v78_v20  ;;  %v81_v32 = vshrl.u32 %v1478_v23, %v78_v20  ;;  %v84_v33 = vshrl.u32 %v1479_v25, %v78_v20  ;;  %v87_v34 = vshrl.u32 %v1480_v27, %v78_v20 }
  0x48   :  { %v90_v35 = vshrl.u32 %v1481_v29, %v78_v20  ;;  %v93_v37 = vshrl.u32 %v1482_v36, %v78_v20  ;;  %vm96_vm7 = vcmp.lt.s32.totalorder %v76_v19, 2  ;;  %vm97_vm8 = vcmp.lt.s32.totalorder %v76_v19, 3 }
  0x49   :  { %v82_v39 = vor.u32 %v81_v32, %v80_v22  ;;  %v85_v40 = vor.u32 %v84_v33, %v83_v24  ;;  %v88_v41 = vor.u32 %v87_v34, %v86_v26 }
  0x4a   :  { %v91_v42 = vor.u32 %v90_v35, %v89_v28  ;;  %v94_v43 = vor.u32 %v93_v37, %v92_v30 }
  0x4b   :  { %v99_v44 = vsel %vm95_vm5, %v79_v31, %v82_v39  ;;  %v100_v45 = vsel %vm98_vm6, %v88_v41, 2102212464  ;;  %v103_v46 = vsel %vm95_vm5, %v82_v39, %v85_v40  ;;  %v107_v47 = vsel %vm95_vm5, %v85_v40, %v88_v41 }
  0x4c   :  { %v101_v48 = vsel %vm97_vm8, %v85_v40, %v100_v45  ;;  %v104_v49 = vsel %vm98_vm6, %v91_v42, 920167782  ;;  %v108_v50 = vsel %vm98_vm6, %v94_v43, 1326507024  ;;  %vm155_vm5 = vweird.f32 %v1566_v5 }
  0x4d   :  { %v105_v51 = vsel %vm97_vm8, %v88_v41, %v104_v49  ;;  %v109_v52 = vsel %vm97_vm8, %v91_v42, %v108_v50  ;;  %v102_v53 = vsel %vm96_vm7, %v99_v44, %v101_v48  ;;  %vm273_vm6 = vcmask 97280   ;;  %v429_v48 = vld [vmem:[#allocation5 + $0x28] sm:$0xf] }
  0x4e   :  { %v106_v54 = vsel %vm96_vm7, %v103_v46, %v105_v51  ;;  %v110_v55 = vsel %vm96_vm7, %v107_v47, %v109_v52  ;;  %v118_v60 = vmul.u32 %v111_v38, %v102_v53  ;;  %v428_v47 = vld [vmem:[#allocation5 + $0x20] sm:$0xff] }
  0x4f   :  { %v1578_v56 = vmul.u32.u64.low %v111_v38, %v110_v55  ;;  %v1579_v57 = vmul.u32.u64.high %v111_v38, %v110_v55, %v1578_v56  ;;  %v1581_v58 = vmul.u32.u64.low %v111_v38, %v106_v54  ;;  %v1582_v59 = vmul.u32.u64.high %v111_v38, %v106_v54, %v1581_v58  ;;  %v61_v38 = vld [vmem:[#allocation5] sm:$0xff]  ;;  %v512_v55 = vld [vmem:[#allocation5 + $0x30] sm:$0xff] }
  0x50   :  { %v1295_v44 = vpack.c.bf16 %v62_v9, %v61_v38  ;;  %v1299_v52 = vpack.c.bf16 %v429_v48, %v428_v47  ;;  %v513_v56 = vld [vmem:[#allocation5 + $0x38] sm:$0xf]  ;;  %v1024_v38 = vld [vmem:[#allocation7 + $0x70] sm:$0xff]  ;;  %v1025_v9 = vld [vmem:[#allocation7 + $0x78] sm:$0xff] }
  0x51   :  { %vm120_vm9 = vc.u32 %v1579_v57, %v1581_v58  ;;  %v121_v61 = vadd.s32 1, %v1582_v59  ;;  %v119_v13 = vadd.s32 %v1581_v58, %v1579_v57 }
  0x53   :  { %v122_v62 = vsel %vm120_vm9, %v121_v61, %v1582_v59  ;;  %v1303_v59 = vpack.c.bf16 %v513_v56, %v512_v55 }
  0x54   :  { %v123_v63 = vadd.s32 %v122_v62, %v118_v60  ;;  %v592_v62 = vld [vmem:[#allocation5 + $0x40] sm:$0xff] }
  0x56   :  { %v124_v3 = vadd.s32 536870912, %v123_v63 }
  0x58   :  { %v125_v4 = vshrl.u32 %v124_v3, 30 }
  0x5a   :  { %v126_v6 = vshll.u32 %v125_v4, 30  ;;  %v149_v25 = vsub.s32 4, %v125_v4 }
  0x5c   :  { %v127_v7 = vsub.s32 %v123_v63, %v126_v6  ;;  %v150_v28 = vsel %vm65_vm11, %v149_v25, %v125_v4  ;;  %v593_v63 = vld [vmem:[#allocation5 + $0x48] sm:$0xf]  ;;  %v676_v6 = vld [vmem:[#allocation5 + $0x50] sm:$0xff] }
  0x5d   :  { %v152_v31 = vsel %vm64_vm12, 0, %v150_v28  ;;  %v1014_v25 = vld [vmem:[#allocation7 + $0x20] sm:$0xff] }
  0x5e   :  { %v129_v8 = vsub.s32 0, %v127_v7  ;;  %v156_v32 = vadd.s32 3, %v152_v31  ;;  %v260_v34 = vand.u32 3, %v152_v31 }
  0x60   :  { %v1121_v10 = vmin.u32 %v129_v8, %v127_v7  ;;  %v157_v33 = vand.u32 3, %v156_v32  ;;  %vm265_vm14 = vcmp.eq.s32.totalorder %v260_v34, 2  ;;  %vm262_vm1 = vcmp.eq.s32.totalorder %v260_v34, 0  ;;  %v1020_v32 = vld [vmem:[#allocation7 + $0x50] sm:$0xff] }
  0x61   :  { %vm261_vm4 = vcmp.lt.s32.totalorder %v260_v34, 2 }
  0x62   :  { %v131_v11 = vclz %v1121_v10  ;;  %vm162_vm13 = vcmp.eq.s32.totalorder %v157_v33, 2  ;;  %vm159_vm15 = vcmp.eq.s32.totalorder %v157_v33, 0  ;;  %vm158_vm2 = vcmp.lt.s32.totalorder %v157_v33, 2  ;;  %v1021_v33 = vld [vmem:[#allocation7 + $0x58] sm:$0xff] }
  0x63   :  { %v1342_v34 = vpack.c.bf16 %v1021_v33, %v1020_v32 }
  0x64   :  { %v1122_v12 = vadd.s32 4294967294, %v131_v11  ;;  %v756_v11 = vld [vmem:[#allocation5 + $0x60] sm:$0xff] }
  0x66   :  { %vm1123_vm10 = vcmp.lt.s32.totalorder %v1122_v12, 0 }
  0x67   :  { %v134_v14 = vsel %vm1123_vm10, 0, %v1122_v12  ;;  %v757_v12 = vld [vmem:[#allocation5 + $0x68] sm:$0xf] }
  0x68   :  { %v135_v15 = vsub.s32 32, %v134_v14  ;;  %v136_v16 = vshll.u32 %v127_v7, %v134_v14  ;;  %v139_v17 = vsub.s32 4294967266, %v134_v14  ;;  %v677_v7 = vld [vmem:[#allocation5 + $0x58] sm:$0xf]  ;;  %v920_v14 = vld [vmem:[#allocation5 + $0x80] sm:$0xff] }
  0x69   :  { %v1311_v10 = vpack.c.bf16 %v677_v7, %v676_v6 }
  0x6a   :  { %v137_v18 = vshrl.u32 %v119_v13, %v135_v15  ;;  %v140_v19 = vadd.s32 127, %v139_v17  ;;  %v1315_v13 = vpack.c.bf16 %v757_v12, %v756_v11  ;;  %v921_v15 = vld [vmem:[#allocation5 + $0x88] sm:$0xf] }
  0x6b   :  { %v1323_v17 = vpack.c.bf16 %v921_v15, %v920_v14 }
  0x6c   :  { %v138_v20 = vor.u32 %v137_v18, %v136_v16  ;;  %v141_v21 = vshll.u32 %v140_v19, 23  ;;  %v1010_v19 = vld [vmem:[#allocation7] sm:$0xff] }
  0x6e   :  { %v142_v22 = vor.u32 4788187, %v141_v21  ;;  %v145_v23 = vcvt.s32.f32 %v138_v20  ;;  %v1011_v20 = vld [vmem:[#allocation7 + $0x8] sm:$0xff] }
  0x6f   :  { %v1327_v21 = vpack.c.bf16 %v1011_v20, %v1010_v19 }
  0x70   :  { %v143_v24 = vand.u32 2147483647, %v142_v22  ;;  %v1012_v22 = vld [vmem:[#allocation7 + $0x10] sm:$0xff] }
  0x72   :  { %v146_v26 = vmul.f32 %v145_v23, %v143_v24  ;;  %v1013_v23 = vld [vmem:[#allocation7 + $0x18] sm:$0xff] }
  0x73   :  { %v1330_v24 = vpack.c.bf16 %v1013_v23, %v1012_v22 }
  0x74   :  { %v147_v27 = vxor.u32 2147483648, %v146_v26 }
  0x76   :  { %v148_v29 = vsel %vm65_vm11, %v147_v27, %v146_v26  ;;  %v1333_v26 = vpack.c.bf16 %v1015_v2, %v1014_v25  ;;  %v1017_v27 = vld [vmem:[#allocation7 + $0x38] sm:$0xff] }
  0x77   :  { %v151_v30 = vsel %vm64_vm12, %v1566_v5, %v148_v29  ;;  %v1018_v29 = vld [vmem:[#allocation7 + $0x40] sm:$0xff] }
  0x78   :  { %1370 = vcosq.f32 %v151_v30 }
  0x79   :  { %1372 = vsinq.f32 %v151_v30  ;;  %v1019_v30 = vld [vmem:[#allocation7 + $0x48] sm:$0xff] }
  0x7a   :  { %v1339_v31 = vpack.c.bf16 %v1019_v30, %v1018_v29 }
  0x82   :  { %v1371_v35 = vpop.eup %1370 }
  0x83   :  { %v1373_v36 = vpop.eup %1372  ;;  %v163_v37 = vxor.u32 2147483648, %v1371_v35 }
  0x84   :  { %v160_v39 = vxor.u32 2147483648, %v1373_v36 }
  0x85   :  { %v164_v40 = vsel %vm162_vm13, %v163_v37, %v1373_v36  ;;  %v267_v41 = vsel %vm265_vm14, %v163_v37, %v1373_v36  ;;  %v1023_v36 = vld [vmem:[#allocation7 + $0x68] sm:$0xff] }
  0x86   :  { %v161_v42 = vsel %vm159_vm15, %v1371_v35, %v160_v39  ;;  %v264_v43 = vsel %vm262_vm1, %v1371_v35, %v160_v39  ;;  %v1022_v35 = vld [vmem:[#allocation7 + $0x60] sm:$0xff]  ;;  %v1348_v39 = vpack.c.bf16 %v1025_v9, %v1024_v38 }
  0x87   :  { %v165_v45 = vsel %vm158_vm2, %v161_v42, %v164_v40  ;;  %v268_v46 = vsel %vm261_vm4, %v264_v43, %v267_v41  ;;  %v1345_v37 = vpack.c.bf16 %v1023_v36, %v1022_v35 }
  0x88   :  { %v166_v49 = vsel %vm155_vm5, nan, %v165_v45  ;;  %v269_v51 = vsel %vm155_vm5, nan, %v268_v46 }
  0x89   :  { %1197 = vmatmul.mubr.msk.f32.vlgmr.msra.gmra.mrb[0].mxu0 %vm273_vm6, %v166_v49  ;;  %v507_v50 = vmul.f32 2.0, %v166_v49 }
  0x8a   :  { %1297 = vmatpush3.bf16.msk.msra.mxu0 %vm1562_vm3, %v1295_v44  ;;  %1203 = vmatprep.mubr.msk.f32.mxu0 %vm1474_vm0, %v1475_v1 }
  0x8b   :  { %v508_v53 = vmul.f32 %v507_v50, %v269_v51  ;;  %v509_v54 = vmul.f32 %v507_v50, %v166_v49  ;;  %1298 = vmatprep.subr.bf16.mxu0 %v1473_v0 }
  0x8d   :  { %v510_v57 = vsub.f32 1.0, %v509_v54  ;;  %v671_v58 = vmul.f32 2.0, %v508_v53  ;;  %1204 = vmatmul.mubr.msk.f32.vlgmr.msra.gmra.mrb[2].mxu0 %vm273_vm6, %v1566_v5  ;;  %v1307_v5 = vpack.c.bf16 %v593_v63, %v592_v62  ;;  %v1146_v63 = vld [vmem:[%s1666_s2] ss:$0 sm:$0xff] }
  0x8e   :  { %1301 = vmatpush3.bf16.msk.msra.mxu0 %vm1562_vm3, %v1299_v52  ;;  %1210 = vmatprep.mubr.msk.f32.mxu0 %vm1474_vm0, %v1475_v1 }
  0x8f   :  { %v672_v60 = vmul.f32 %v671_v58, %v510_v57  ;;  %v673_v61 = vmul.f32 %v671_v58, %v508_v53  ;;  %1302 = vmatprep.subr.bf16.mxu0 %v1473_v0 }
  0x91   :  { %v674_v3 = vsub.f32 1.0, %v673_v61  ;;  %1211 = vmatmul.mubr.msk.f32.vlgmr.msra.gmra.mrb[4].mxu0 %vm273_vm6, %v269_v51  ;;  %v835_v4 = vmul.f32 2.0, %v672_v60 }
  0x92   :  { %1305 = vmatpush3.bf16.msk.msra.mxu0 %vm1562_vm3, %v1303_v59  ;;  %1217 = vmatprep.mubr.msk.f32.mxu0 %vm1474_vm0, %v1475_v1 }
  0x93   :  { %1306 = vmatprep.subr.bf16.mxu0 %v1473_v0  ;;  %v836_v8 = vmul.f32 %v835_v4, %v674_v3  ;;  %v837_v16 = vmul.f32 %v835_v4, %v672_v60 }
  0x95   :  { %1218 = vmatmul.mubr.msk.f32.vlgmr.msra.gmra.mrb[6].mxu0 %vm273_vm6, %v508_v53  ;;  %1246 = vmatmul.mubr.msk.f32.vlgmr.msra.gmra.mrb[0].mxu1 %vm273_vm6, %v836_v8  ;;  %v838_v18 = vsub.f32 1.0, %v837_v16  ;;  %v1147_v8 = vld [vmem:[%s1668_s4] ss:$0 sm:$0xff] }
  0x96   :  { %1309 = vmatpush3.bf16.msk.msra.mxu0 %vm1562_vm3, %v1307_v5  ;;  %1224 = vmatprep.mubr.msk.f32.mxu0 %vm1474_vm0, %v1475_v1 }
  0x97   :  { %1310 = vmatprep.subr.bf16.mxu0 %v1473_v0  ;;  %1287 = vmatprep.mubr.msk.f32.mxu1 %vm1474_vm0, %v1475_v1 }
  0x98   :  { %1328 = vmatpush3.bf16.msra.mxu1 %v1327_v21 }
  0x99   :  { %1225 = vmatmul.mubr.msk.f32.vlgmr.msra.gmra.mrb[8].mxu0 %vm273_vm6, %v510_v57  ;;  %1329 = vmatprep.subr.bf16.mxu1 %v1473_v0 }
  0x9a   :  { %1313 = vmatpush3.bf16.msk.msra.mxu0 %vm1562_vm3, %v1311_v10  ;;  %1231 = vmatprep.mubr.msk.f32.mxu0 %vm1474_vm0, %v1475_v1 }
  0x9b   :  { %1314 = vmatprep.subr.bf16.mxu0 %v1473_v0 }
  0x9c   :  { %1331 = vmatpush3.bf16.msra.mxu1 %v1330_v24 }
  0x9d   :  { %1232 = vmatmul.mubr.msk.f32.vlgmr.msra.gmra.mrb[10].mxu0 %vm273_vm6, %v672_v60  ;;  %1332 = vmatprep.subr.bf16.mxu1 %v1473_v0 }
  0x9e   :  { %1317 = vmatpush3.bf16.msk.msra.mxu0 %vm1562_vm3, %v1315_v13  ;;  %1238 = vmatprep.mubr.msk.f32.mxu0 %vm1474_vm0, %v1475_v1 }
  0x9f   :  { %1322 = vmatprep.subr.bf16.mxu0 %v1473_v0 }
  0xa0   :  { %1334 = vmatpush3.bf16.msra.mxu1 %v1333_v26 }
  0xa1   :  { %1239 = vmatmul.mubr.msk.f32.vlgmr.msra.gmra.mrb[12].mxu0 %vm273_vm6, %v674_v3  ;;  %1335 = vmatprep.subr.bf16.mxu1 %v1473_v0 }
  0xa2   :  { %1325 = vmatpush3.bf16.msk.msra.mxu0 %vm1562_vm3, %v1323_v17  ;;  %1252 = vmatprep.mubr.msk.f32.mxu0 %vm1474_vm0, %v1475_v1  ;;  %v1016_v1 = vld [vmem:[#allocation7 + $0x30] sm:$0xff] }
  0xa3   :  { %v1336_v28 = vpack.c.bf16 %v1017_v27, %v1016_v1 }
  0xa5   :  { %1253 = vmatmul.mubr.msk.f32.vlgmr.msra.gmra.mrb[14].mxu0 %vm273_vm6, %v838_v18  ;;  %1337 = vmatpush3.bf16.msra.mxu1 %v1336_v28 }
  0xa6   :  { %1338 = vmatprep.subr.bf16.mxu1 %v1473_v0 }
  0xa9   :  { %1340 = vmatpush3.bf16.msra.mxu1 %v1339_v31 }
  0xaa   :  { %1341 = vmatprep.subr.bf16.mxu1 %v1473_v0 }
  0xad   :  { %1343 = vmatpush3.bf16.msra.mxu1 %v1342_v34 }
  0xae   :  { %1344 = vmatprep.subr.bf16.mxu1 %v1473_v0 }
  0xb1   :  { %1346 = vmatpush3.bf16.msra.mxu1 %v1345_v37 }
  0xb2   :  { %1347 = vmatprep.subr.bf16.mxu1 %v1473_v0 }
  0xb5   :  { %1349 = vmatpush3.bf16.msra.mxu1 %v1348_v39 }
 0x15c   :  { %v347_v40 = vpop.f32.mrb[0].mxu0 }
 0x15d   :  { %v1198_v41 = vpop.f32.mrb[1].mxu0 }
 0x160   :  { %v423_v42 = vpop.f32.mrb[2].mxu0 }
 0x161   :  { %v424_v43 = vadd.f32 %v423_v42, %v347_v40  ;;  %v1205_v44 = vpop.f32.mrb[3].mxu0 }
 0x164   :  { %v502_v45 = vpop.f32.mrb[4].mxu0 }
 0x165   :  { %v506_v46 = vadd.f32 %v502_v45, %v424_v43  ;;  %v1212_v47 = vpop.f32.mrb[5].mxu0 }
 0x168   :  { %v586_v48 = vpop.f32.mrb[6].mxu0  ;;  %v914_v49 = vpop.f32.mrb[0].mxu1 }
 0x169   :  { %v590_v50 = vadd.f32 %v586_v48, %v506_v46  ;;  %v1219_v51 = vpop.f32.mrb[7].mxu0  ;;  %v1247_v52 = vpop.f32.mrb[1].mxu1 }
 0x16c   :  { %v666_v53 = vpop.f32.mrb[8].mxu0 }
 0x16d   :  { %v670_v54 = vadd.f32 %v666_v53, %v590_v50  ;;  %v1226_v0 = vpop.f32.mrb[9].mxu0 }
 0x170   :  { %v750_v55 = vpop.f32.mrb[10].mxu0 }
 0x171   :  { %v754_v56 = vadd.f32 %v750_v55, %v670_v54  ;;  %v1233_v57 = vpop.f32.mrb[11].mxu0 }
 0x174   :  { %v830_v58 = vpop.f32.mrb[12].mxu0 }
 0x175   :  { %v834_v59 = vadd.f32 %v830_v58, %v754_v56  ;;  %v1240_v60 = vpop.f32.mrb[13].mxu0 }
 0x177   :  { %v918_v61 = vadd.f32 %v914_v49, %v834_v59 }
 0x178   :  { %v994_v62 = vpop.f32.mrb[14].mxu0 }
 0x179   :  { %v998_v3 = vadd.f32 %v994_v62, %v918_v61  ;;  %v1254_v4 = vpop.f32.mrb[15].mxu0 }
 0x17b   :  { %v1006_v5 = vadd.f32 %v1146_v63, %v998_v3 }
 0x17d   :  { %v1008_v6 = vmul.f32 0.01, %v1006_v5  ;;  %vm1007_vm0 = vcmp.gt.f32.partialorder %v1006_v5, 0.0 }
 0x17f   :  { %v1009_v7 = vsel %vm1007_vm0, %v1006_v5, %v1008_v6 }
 0x180   :  { %1288 = vmatmul.mubr.f32.vlgmr.msra.gmra.mrb[2].mxu1 %v1009_v7 }
 0x253   :  { %v1099_v10 = vpop.f32.mrb[2].mxu1 }
 0x254   :  { %v1100_v11 = vadd.f32 %v1147_v8, %v1099_v10  ;;  %v1289_v12 = vpop.f32.mrb[3].mxu1 }
 0x256   :  { %1103 = vst [vmem:[#allocation8] sm:$0xff] %v1100_v11 }
 0x257   :  { %1451 = shalt.err (!%p1448_p0)
}
 0x258   :  { %s1452_s11 = scalar_lea.hbm %s1669_s5, 128 }
 0x259   :  { %p1453_p1 = scmp.ne.s32.totalorder %s1669_s5, %s1452_s11  ;;  %p1456_p2 = scmp.lt.u32.totalorder %s1452_s11, %s1669_s5 }
 0x25b   :  { %p1458_p3 = pnand %p1456_p2, %p1453_p1 }
 0x25d   :  { %1461 = shalt.err (!%p1458_p3)
}
 0x25e   :  { %1113 = dma.vmem_to_hbm [thread:$0]  %s1111_s8, 128, %s1669_s5, [#allocation4]  }
 0x25f   :  { %1466 = dma.done.wait [#allocation4], 128  }
 0x260   :  { %1467 = vsyncadd [#allocation4], 4294967168 }
 0x261   :  { %1117 = vsyncpa [#allocation3], 1 }
 0x262   :  { %1118 = vsyncpa [#allocation6], 1 }
 0x263   :  { %1119 = vsyncpa [#allocation4], 1 }

</bundles_post_ra>
